<compile_context>
chip_gen: v5e
topology: v5e:2x2
jax: 0.10.0
libtpu: 0.0.40
codegen_flags: <defaults>
</compile_context>

<pallas_src>
import jax
import jax.numpy as jnp
from jax.experimental import pallas as pl
from jax.experimental.pallas import tpu as pltpu  # noqa: F401  (imported per convention)


# ----------------------------------------------------------------------------- kernel
def attention_kernel(enc_ref, dec_ref, out_ref):
    """Whole batch in one shot.

    enc_ref : (B, T, H)   encoder outputs (all batches), f32
    dec_ref : (L*B, H)    decoder hidden states flattened l-major / b-fastest, f32
    out_ref : (L*B, H)    attention readout, same row order as dec_ref
    """
    LB, H = dec_ref.shape
    B, T, _ = enc_ref.shape

    dec = dec_ref[...]                                   # (L*B, H) f32
    dec_bf = dec.astype(jnp.bfloat16)                    # MXU operand

    # row r = l*B + b  ->  batch id of row r is (r % B)
    rows = jax.lax.broadcasted_iota(jnp.int32, (LB, 1), 0)

    # ---- scores: each row contracts against the encoder tile of its own batch ----
    enc_bf = []
    scores = jnp.zeros((LB, T), jnp.float32)
    for b in range(B):                                   # B is tiny & static -> unrolled
        e_b = enc_ref[b].astype(jnp.bfloat16)            # (T, H)
        enc_bf.append(e_b)
        # "NT" matmul on the MXU: contract H without materializing a transpose.
        s_b = jax.lax.dot_general(
            dec_bf, e_b, (((1,), (1,)), ((), ())),
            preferred_element_type=jnp.float32)          # (L*B, T) f32
        scores = jnp.where(rows % B == b, s_b, scores)

    # ---- softmax over T (f32 on VPU; reciprocal on EUP) ----
    m = jnp.max(scores, axis=-1, keepdims=True)
    e = jnp.exp(scores - m)
    denom = jnp.sum(e, axis=-1, keepdims=True)
    w = e * pl.reciprocal(denom, approx=True)            # (L*B, T), rows sum to ~1

    # ---- readout: zero out rows that don't belong to batch b, accumulate ----
    out = jnp.zeros((LB, H), jnp.float32)
    for b in range(B):
        w_b = jnp.where(rows % B == b, w, 0.0).astype(jnp.bfloat16)
        out = out + jnp.dot(w_b, enc_bf[b], preferred_element_type=jnp.float32)

    out_ref[...] = out.astype(out_ref.dtype)


# ----------------------------------------------------------------------------- wrapper
@jax.jit
def attention_forward(encoder_output, decoder_hidden_state):
    """Matches Attention.forward.

    encoder_output       : (B, T, H) float32
    decoder_hidden_state : (L, B, H) float32
    returns              : (L, B, H) float32
    """
    B, T, H = encoder_output.shape
    L = decoder_hidden_state.shape[0]

    # contiguous (free) reshape: (L, B, H) -> (L*B, H); row r = l*B + b
    dec2d = jnp.reshape(decoder_hidden_state, (L * B, H))

    out2d = pl.pallas_call(
        attention_kernel,
        out_shape=jax.ShapeDtypeStruct((L * B, H), jnp.float32),
    )(encoder_output, dec2d)

    # contiguous (free) reshape back to torch's (L, B, H) layout
    return jnp.reshape(out2d, (L, B, H))


# ----------------------------------------------------------------------------- pure-JAX reference
def attention_ref(encoder_output, decoder_hidden_state):
    hp = jax.lax.Precision.HIGHEST
    dec_p = jnp.transpose(decoder_hidden_state, (1, 2, 0))                 # (B, H, L)
    aw = jnp.matmul(encoder_output, dec_p, precision=hp)                   # (B, T, L)
    aw = jax.nn.softmax(aw, axis=1)
    aw = jnp.transpose(aw, (0, 2, 1))                                      # (B, L, T)
    attn = jnp.matmul(aw, encoder_output, precision=hp)                    # (B, L, H)
    return jnp.transpose(attn, (1, 0, 2))                                  # (L, B, H)


# ----------------------------------------------------------------------------- main
if __name__ == "__main__":
    hid_dim = 32
    batch, seq = 2, 8
    n_dec = 4   # leading dim of the decoder hidden state (e.g. num_layers)

    key = jax.random.PRNGKey(0)
    k_enc, k_dec = jax.random.split(key)
    encoder_output = jax.random.normal(k_enc, (batch, seq, hid_dim), dtype=jnp.float32)
    decoder_hidden = jax.random.normal(k_dec, (n_dec, batch, hid_dim), dtype=jnp.float32)

    attn = attention_forward(encoder_output, decoder_hidden)
    jax.block_until_ready(attn)

    assert attn.shape == (n_dec, batch, hid_dim), attn.shape

    ref = attention_ref(encoder_output, decoder_hidden)
    # tolerance loosened vs. the pure-f32 version: MXU operands are bf16 (f32 accumulate)
    # and the softmax denominator uses the approximate EUP reciprocal.
    assert jnp.allclose(attn, ref, rtol=5e-2, atol=5e-2), "attention mismatch"

    print("KERNEL_OK")
</pallas_src>

<mosaic_0001>
module attributes {stable_mosaic.version = 11 : i64} {
  func.func @attention_kernel(%arg0: memref<2x8x32xf32, #tpu.memory_space<vmem>>, %arg1: memref<8x32xf32, #tpu.memory_space<vmem>>, %arg2: memref<8x32xf32, #tpu.memory_space<vmem>>) attributes {dimension_semantics = [], scalar_prefetch = 0 : i64, scratch_operands = 0 : i64, tpu.core_type = #tpu.core_type<tc>} {
    %c0 = arith.constant 0 : index
    %c0_0 = arith.constant 0 : index
    %0 = vector.load %arg1[%c0, %c0_0] : memref<8x32xf32, #tpu.memory_space<vmem>>, vector<8x32xf32>
    %1 = arith.truncf %0 : vector<8x32xf32> to vector<8x32xbf16>
    %2 = tpu.iota {dimensions = array<i32: 0>} : vector<8x1xi32>
    %cst = arith.constant 0.000000e+00 : f32
    %3 = vector.broadcast %cst : f32 to vector<8x8xf32>
    %c0_1 = arith.constant 0 : index
    %c0_2 = arith.constant 0 : index
    %c0_3 = arith.constant 0 : index
    %4 = vector.load %arg0[%c0_1, %c0_2, %c0_3] : memref<2x8x32xf32, #tpu.memory_space<vmem>>, vector<1x8x32xf32>
    %5 = vector.shape_cast %4 : vector<1x8x32xf32> to vector<8x32xf32>
    %6 = arith.truncf %5 : vector<8x32xf32> to vector<8x32xbf16>
    %cst_4 = arith.constant dense<0.000000e+00> : vector<8x8xf32>
    %7 = tpu.matmul %1, %6, %cst_4 {dimension_numbers = #tpu.dot_dimension_numbers<[1], [1], [0], [0], [0, 0, 1, 0], [], []>} : vector<8x32xbf16>, vector<8x32xbf16>, vector<8x8xf32> -> vector<8x8xf32>
    %c2_i32 = arith.constant 2 : i32
    %c0_i32 = arith.constant 0 : i32
    %8 = arith.cmpi eq, %c2_i32, %c0_i32 : i32
    %c1_i32 = arith.constant 1 : i32
    %9 = arith.select %8, %c1_i32, %c2_i32 : i32
    %10 = vector.broadcast %9 : i32 to vector<8x1xi32>
    %11 = arith.remsi %2, %10 : vector<8x1xi32>
    %c0_i32_5 = arith.constant 0 : i32
    %12 = vector.broadcast %c0_i32_5 : i32 to vector<8x1xi32>
    %13 = arith.cmpi ne, %11, %12 : vector<8x1xi32>
    %c0_i32_6 = arith.constant 0 : i32
    %14 = vector.broadcast %c0_i32_6 : i32 to vector<8x1xi32>
    %15 = arith.cmpi slt, %11, %14 : vector<8x1xi32>
    %c0_i32_7 = arith.constant 0 : i32
    %16 = arith.cmpi slt, %9, %c0_i32_7 : i32
    %17 = vector.broadcast %16 : i1 to vector<8x1xi1>
    %18 = vector.broadcast %17 : vector<8x1xi1> to vector<8x1xi1>
    %19 = arith.xori %15, %18 : vector<8x1xi1>
    %20 = arith.andi %19, %13 : vector<8x1xi1>
    %21 = vector.broadcast %9 : i32 to vector<8x1xi32>
    %22 = arith.addi %11, %21 : vector<8x1xi32>
    %23 = arith.select %20, %22, %11 : vector<8x1xi1>, vector<8x1xi32>
    %c0_i32_8 = arith.constant 0 : i32
    %24 = vector.broadcast %c0_i32_8 : i32 to vector<8x1xi32>
    %25 = arith.cmpi eq, %23, %24 : vector<8x1xi32>
    %26 = vector.shape_cast %25 : vector<8x1xi1> to vector<8x1xi1>
    %27 = vector.broadcast %26 : vector<8x1xi1> to vector<8x8xi1>
    %28 = arith.select %27, %7, %3 : vector<8x8xi1>, vector<8x8xf32>
    %c1 = arith.constant 1 : index
    %c0_9 = arith.constant 0 : index
    %c0_10 = arith.constant 0 : index
    %29 = vector.load %arg0[%c1, %c0_9, %c0_10] : memref<2x8x32xf32, #tpu.memory_space<vmem>>, vector<1x8x32xf32>
    %30 = vector.shape_cast %29 : vector<1x8x32xf32> to vector<8x32xf32>
    %31 = arith.truncf %30 : vector<8x32xf32> to vector<8x32xbf16>
    %cst_11 = arith.constant dense<0.000000e+00> : vector<8x8xf32>
    %32 = tpu.matmul %1, %31, %cst_11 {dimension_numbers = #tpu.dot_dimension_numbers<[1], [1], [0], [0], [0, 0, 1, 0], [], []>} : vector<8x32xbf16>, vector<8x32xbf16>, vector<8x8xf32> -> vector<8x8xf32>
    %c2_i32_12 = arith.constant 2 : i32
    %c0_i32_13 = arith.constant 0 : i32
    %33 = arith.cmpi eq, %c2_i32_12, %c0_i32_13 : i32
    %c1_i32_14 = arith.constant 1 : i32
    %34 = arith.select %33, %c1_i32_14, %c2_i32_12 : i32
    %35 = vector.broadcast %34 : i32 to vector<8x1xi32>
    %36 = arith.remsi %2, %35 : vector<8x1xi32>
    %c0_i32_15 = arith.constant 0 : i32
    %37 = vector.broadcast %c0_i32_15 : i32 to vector<8x1xi32>
    %38 = arith.cmpi ne, %36, %37 : vector<8x1xi32>
    %c0_i32_16 = arith.constant 0 : i32
    %39 = vector.broadcast %c0_i32_16 : i32 to vector<8x1xi32>
    %40 = arith.cmpi slt, %36, %39 : vector<8x1xi32>
    %c0_i32_17 = arith.constant 0 : i32
    %41 = arith.cmpi slt, %34, %c0_i32_17 : i32
    %42 = vector.broadcast %41 : i1 to vector<8x1xi1>
    %43 = vector.broadcast %42 : vector<8x1xi1> to vector<8x1xi1>
    %44 = arith.xori %40, %43 : vector<8x1xi1>
    %45 = arith.andi %44, %38 : vector<8x1xi1>
    %46 = vector.broadcast %34 : i32 to vector<8x1xi32>
    %47 = arith.addi %36, %46 : vector<8x1xi32>
    %48 = arith.select %45, %47, %36 : vector<8x1xi1>, vector<8x1xi32>
    %c1_i32_18 = arith.constant 1 : i32
    %49 = vector.broadcast %c1_i32_18 : i32 to vector<8x1xi32>
    %50 = arith.cmpi eq, %48, %49 : vector<8x1xi32>
    %51 = vector.shape_cast %50 : vector<8x1xi1> to vector<8x1xi1>
    %52 = vector.broadcast %51 : vector<8x1xi1> to vector<8x8xi1>
    %53 = arith.select %52, %32, %28 : vector<8x8xi1>, vector<8x8xf32>
    %cst_19 = arith.constant dense<0xFF800000> : vector<8xf32>
    %54 = vector.multi_reduction <maximumf>, %53, %cst_19 [1] : vector<8x8xf32> to vector<8xf32>
    %55 = vector.shape_cast %54 : vector<8xf32> to vector<8x1xf32>
    %56 = vector.broadcast %55 : vector<8x1xf32> to vector<8x8xf32>
    %57 = arith.subf %53, %56 : vector<8x8xf32>
    %58 = math.exp %57 : vector<8x8xf32>
    %cst_20 = arith.constant dense<0.000000e+00> : vector<8xf32>
    %59 = vector.multi_reduction <add>, %58, %cst_20 [1] : vector<8x8xf32> to vector<8xf32>
    %60 = vector.shape_cast %59 : vector<8xf32> to vector<8x1xf32>
    %61 = tpu.reciprocal %60 {approx = true} : vector<8x1xf32> -> vector<8x1xf32>
    %62 = vector.broadcast %61 : vector<8x1xf32> to vector<8x8xf32>
    %63 = arith.mulf %58, %62 : vector<8x8xf32>
    %cst_21 = arith.constant 0.000000e+00 : f32
    %64 = vector.broadcast %cst_21 : f32 to vector<8x32xf32>
    %c2_i32_22 = arith.constant 2 : i32
    %c0_i32_23 = arith.constant 0 : i32
    %65 = arith.cmpi eq, %c2_i32_22, %c0_i32_23 : i32
    %c1_i32_24 = arith.constant 1 : i32
    %66 = arith.select %65, %c1_i32_24, %c2_i32_22 : i32
    %67 = vector.broadcast %66 : i32 to vector<8x1xi32>
    %68 = arith.remsi %2, %67 : vector<8x1xi32>
    %c0_i32_25 = arith.constant 0 : i32
    %69 = vector.broadcast %c0_i32_25 : i32 to vector<8x1xi32>
    %70 = arith.cmpi ne, %68, %69 : vector<8x1xi32>
    %c0_i32_26 = arith.constant 0 : i32
    %71 = vector.broadcast %c0_i32_26 : i32 to vector<8x1xi32>
    %72 = arith.cmpi slt, %68, %71 : vector<8x1xi32>
    %c0_i32_27 = arith.constant 0 : i32
    %73 = arith.cmpi slt, %66, %c0_i32_27 : i32
    %74 = vector.broadcast %73 : i1 to vector<8x1xi1>
    %75 = vector.broadcast %74 : vector<8x1xi1> to vector<8x1xi1>
    %76 = arith.xori %72, %75 : vector<8x1xi1>
    %77 = arith.andi %76, %70 : vector<8x1xi1>
    %78 = vector.broadcast %66 : i32 to vector<8x1xi32>
    %79 = arith.addi %68, %78 : vector<8x1xi32>
    %80 = arith.select %77, %79, %68 : vector<8x1xi1>, vector<8x1xi32>
    %c0_i32_28 = arith.constant 0 : i32
    %81 = vector.broadcast %c0_i32_28 : i32 to vector<8x1xi32>
    %82 = arith.cmpi eq, %80, %81 : vector<8x1xi32>
    %cst_29 = arith.constant 0.000000e+00 : f32
    %83 = vector.shape_cast %82 : vector<8x1xi1> to vector<8x1xi1>
    %84 = vector.broadcast %83 : vector<8x1xi1> to vector<8x8xi1>
    %85 = vector.broadcast %cst_29 : f32 to vector<8x8xf32>
    %86 = arith.select %84, %63, %85 : vector<8x8xi1>, vector<8x8xf32>
    %87 = arith.truncf %86 : vector<8x8xf32> to vector<8x8xbf16>
    %cst_30 = arith.constant dense<0.000000e+00> : vector<8x32xf32>
    %88 = tpu.matmul %87, %6, %cst_30 {dimension_numbers = #tpu.dot_dimension_numbers<[1], [0], [0], [1], [0, 0, 1, 1], [], []>} : vector<8x8xbf16>, vector<8x32xbf16>, vector<8x32xf32> -> vector<8x32xf32>
    %89 = arith.addf %64, %88 : vector<8x32xf32>
    %c2_i32_31 = arith.constant 2 : i32
    %c0_i32_32 = arith.constant 0 : i32
    %90 = arith.cmpi eq, %c2_i32_31, %c0_i32_32 : i32
    %c1_i32_33 = arith.constant 1 : i32
    %91 = arith.select %90, %c1_i32_33, %c2_i32_31 : i32
    %92 = vector.broadcast %91 : i32 to vector<8x1xi32>
    %93 = arith.remsi %2, %92 : vector<8x1xi32>
    %c0_i32_34 = arith.constant 0 : i32
    %94 = vector.broadcast %c0_i32_34 : i32 to vector<8x1xi32>
    %95 = arith.cmpi ne, %93, %94 : vector<8x1xi32>
    %c0_i32_35 = arith.constant 0 : i32
    %96 = vector.broadcast %c0_i32_35 : i32 to vector<8x1xi32>
    %97 = arith.cmpi slt, %93, %96 : vector<8x1xi32>
    %c0_i32_36 = arith.constant 0 : i32
    %98 = arith.cmpi slt, %91, %c0_i32_36 : i32
    %99 = vector.broadcast %98 : i1 to vector<8x1xi1>
    %100 = vector.broadcast %99 : vector<8x1xi1> to vector<8x1xi1>
    %101 = arith.xori %97, %100 : vector<8x1xi1>
    %102 = arith.andi %101, %95 : vector<8x1xi1>
    %103 = vector.broadcast %91 : i32 to vector<8x1xi32>
    %104 = arith.addi %93, %103 : vector<8x1xi32>
    %105 = arith.select %102, %104, %93 : vector<8x1xi1>, vector<8x1xi32>
    %c1_i32_37 = arith.constant 1 : i32
    %106 = vector.broadcast %c1_i32_37 : i32 to vector<8x1xi32>
    %107 = arith.cmpi eq, %105, %106 : vector<8x1xi32>
    %cst_38 = arith.constant 0.000000e+00 : f32
    %108 = vector.shape_cast %107 : vector<8x1xi1> to vector<8x1xi1>
    %109 = vector.broadcast %108 : vector<8x1xi1> to vector<8x8xi1>
    %110 = vector.broadcast %cst_38 : f32 to vector<8x8xf32>
    %111 = arith.select %109, %63, %110 : vector<8x8xi1>, vector<8x8xf32>
    %112 = arith.truncf %111 : vector<8x8xf32> to vector<8x8xbf16>
    %cst_39 = arith.constant dense<0.000000e+00> : vector<8x32xf32>
    %113 = tpu.matmul %112, %31, %cst_39 {dimension_numbers = #tpu.dot_dimension_numbers<[1], [0], [0], [1], [0, 0, 1, 1], [], []>} : vector<8x8xbf16>, vector<8x32xbf16>, vector<8x32xf32> -> vector<8x32xf32>
    %114 = arith.addf %89, %113 : vector<8x32xf32>
    %c0_40 = arith.constant 0 : index
    %c0_41 = arith.constant 0 : index
    %115 = vector.load %arg2[%c0_40, %c0_41] : memref<8x32xf32, #tpu.memory_space<vmem>>, vector<8x32xf32>
    tpu.vector_store %arg2[%c0_40, %c0_41], %114 {strides = array<i32>} : memref<8x32xf32, #tpu.memory_space<vmem>>, vector<8x32xf32>,
    return
  }
}

</mosaic_0001>

<bundles_post_ra>
// kernel: attention_forward.1
= control target key start
LH: loop header
LB: loop body
LE: loop exit
PB: predicated region body
PF: predicated region fallthrough
CT: control target
= control target key end

     0   :  { %7 = vsyncpa [#allocation3], 0  ;;  %s325_s0 = inlined_call_operand.hbm [shape: f32[2,8,32], index: 0, kind: input, shape index: {}]   ;;  %s326_s1 = inlined_call_operand.hbm [shape: f32[8,32], index: 1, kind: input, shape index: {}]   ;;  %s327_s2 = inlined_call_operand.hbm [shape: f32[8,32], index: 2, kind: output, shape index: {}]  }
   0x1   :  { %8 = vsyncpa [#allocation6], 0 }
   0x2   :  { %9 = vsyncpa [#allocation4], 0  ;;  %s14_s11 = sshll.u32 %s325_s0, 4  ;;  %s271_s12 = smov [#allocation2]   ;;  %s15_s11 = int_to_ptr.hbm [resolvable:$true] %s14_s11 }
   0x3   :  { %s16_s13 = sshll.u32 %s271_s12, 4  ;;  %s28_s16 = sshll.u32 %s326_s1, 4  ;;  %s17_s13 = int_to_ptr.vmem [resolvable:$true] %s16_s13  ;;  %s29_s16 = int_to_ptr.hbm [resolvable:$true] %s28_s16 }
   0x4   :  { %s272_s17 = smov 128   ;;  %s273_s18 = smov 8  }
   0x5   :  { %22 = dma.hbm_to_vmem [thread:$0]  %s15_s11, 256, %s17_s13, [#allocation3], %s272_s17, %s272_s17, %s273_s18  }
   0x6   :  { %s274_s19 = smov [#allocation5]  }
   0x7   :  { %s30_s20 = sshll.u32 %s274_s19, 4  ;;  %s31_s20 = int_to_ptr.vmem [resolvable:$true] %s30_s20 }
   0x8   :  { %33 = dma.hbm_to_vmem [thread:$0]  %s29_s16, 128, %s31_s20, [#allocation6]  }
   0x9   :  { %265 = dma.done.wait [#allocation3], 256  }
   0xa   :  { %266 = vsyncadd [#allocation3], 4294967040 }
   0xb   :  { %267 = dma.done.wait [#allocation6], 128  }
   0xc   :  { %268 = vsyncadd [#allocation6], 4294967168  ;;  %v47_v0 = vld [vmem:[#allocation2] sm:$0xff]  ;;  %vm49_vm0 = vcmask 261120   ;;  %v86_v1 = vld [vmem:[#allocation2 + $0x8] sm:$0xff]  ;;  %v45_v8 = vlaneseq  ;;  %vm108_vm3 = vcmask 64512  }
   0xd   :  { %v48_v2 = vpack.c.bf16 %v47_v0, %v47_v0  ;;  %v87_v3 = vpack.c.bf16 %v86_v1, %v86_v1  ;;  %v43_v6 = vld [vmem:[#allocation5] sm:$0xff]  ;;  %vm127_vm4 = vcmask 1043456   ;;  %s275_s0 = smov [#allocation7]   ;;  %s169_s23 = sshll.u32 %s327_s2, 4  ;;  %s170_s23 = int_to_ptr.hbm [resolvable:$true] %s169_s23 }
   0xe   :  { %v44_v7 = vpack.c.bf16 %v43_v6, %v43_v6  ;;  %v46_v9 = vshrl.u32 %v45_v8, 7  ;;  %s167_s1 = sshll.u32 %s275_s0, 4  ;;  %s168_s1 = int_to_ptr.vmem [resolvable:$true] %s167_s1 }
   0xf   :  { %v54_v4 = vsel %vm49_vm0, %v48_v2, 0  ;;  %v89_v5 = vsel %vm49_vm0, %v87_v3, 0  ;;  %v128_v25 = vsel %vm127_vm4, %v87_v3, 0  ;;  %v146_v26 = vsel %vm127_vm4, %v48_v2, 0 }
  0x10   :  { %63 = vmatpush.bf16.xpose.msra.mxu0 %v54_v4  ;;  %98 = vmatpush.bf16.xpose.msra.mxu1 %v89_v5  ;;  %v73_v10 = vand.u32 1, %v46_v9 }
  0x11   :  { %137 = vmatpush.bf16.msra.mxu2 %v128_v25  ;;  %155 = vmatpush.bf16.msra.mxu3 %v146_v26 }
  0x12   :  { %vm301_vm1 = vcmp.eq.s32.totalorder %v73_v10, 0  ;;  %vm305_vm2 = vcmp.eq.s32.totalorder %v73_v10, 1 }
  0x17   :  { %180 = vmatmul.msk.bf16.vlgmr.msra.gmra.mxu0 %vm49_vm0, %v44_v7  ;;  %181 = vmatmul.msk.bf16.vlgmr.msra.gmra.mxu1 %vm49_vm0, %v44_v7 }
  0x94   :  { %v65_v13 = vpop.f32.mrf.mxu0  ;;  %v100_v14 = vpop.f32.mrf.mxu1 }
  0x95   :  { %v84_v15 = vsel %vm301_vm1, %v65_v13, 0.0 }
  0x96   :  { %v107_v16 = vsel %vm305_vm2, %v100_v14, %v84_v15 }
  0x97   :  { %v109_v17 = vsel %vm108_vm3, %v107_v16, -inf }
  0x98   :  { %110 = vmax.xlane.f32.xlu0 %v109_v17 }
  0x9c   :  { %v67_v18 = vpop.f32.mrf.mxu0  ;;  %v102_v19 = vpop.f32.mrf.mxu1 }
 0x10b   :  { %v111_v20 = vpop.xlane.xlu0 %110 }
 0x10c   :  { %v112_v21 = vsub.f32 %v107_v16, %v111_v20 }
 0x10e   :  { %v113_v22 = vmul.f32 1.442695, %v112_v21 }
 0x110   :  { %189 = vpow2.f32 %v113_v22 }
 0x116   :  { %v190_v23 = vpop.eup %189 }
 0x117   :  { %v115_v24 = vsel %vm108_vm3, %v190_v23, 0.0 }
 0x118   :  { %116 = vadd.xlane.f32.xlu0 %v115_v24 }
 0x18b   :  { %v117_v27 = vpop.xlane.xlu0 %116 }
 0x18c   :  { %191 = vrcp.f32 %v117_v27 }
 0x192   :  { %v192_v28 = vpop.eup %191 }
 0x193   :  { %v119_v29 = vmul.f32 %v192_v28, %v190_v23 }
 0x195   :  { %v122_v30 = vsel %vm305_vm2, %v119_v29, 0.0  ;;  %v120_v31 = vsel %vm301_vm1, %v119_v29, 0.0 }
 0x196   :  { %v123_v32 = vpack.c.bf16 %v122_v30, %v122_v30  ;;  %v121_v33 = vpack.c.bf16 %v120_v31, %v120_v31 }
 0x198   :  { %182 = vmatmul.msk.bf16.vlgmr.msra.gmra.mxu2 %vm108_vm3, %v123_v32  ;;  %183 = vmatmul.msk.bf16.vlgmr.msra.gmra.mxu3 %vm108_vm3, %v121_v33 }
 0x21b   :  { %v139_v34 = vpop.f32.mrf.mxu2  ;;  %v157_v35 = vpop.f32.mrf.mxu3 }
 0x21c   :  { %v158_v36 = vadd.f32 %v157_v35, %v139_v34 }
 0x21e   :  { %161 = vst.msk [vmem:[#allocation7] sm:$0xff] %vm49_vm0, %v158_v36 }
 0x21f   :  { %172 = dma.vmem_to_hbm [thread:$0]  %s168_s1, 128, %s170_s23, [#allocation4]  }
 0x223   :  { %v141_v37 = vpop.f32.mrf.mxu2  ;;  %v159_v38 = vpop.f32.mrf.mxu3 }
 0x224   :  { %269 = dma.done.wait [#allocation4], 128  }
 0x225   :  { %270 = vsyncadd [#allocation4], 4294967168 }
 0x226   :  { %177 = vsyncpa [#allocation3], 1 }
 0x227   :  { %178 = vsyncpa [#allocation6], 1 }
 0x228   :  { %179 = vsyncpa [#allocation4], 1 }

</bundles_post_ra>
